<compile_context>
chip_gen: v5e
topology: v5e:2x2
jax: 0.10.0
libtpu: 0.0.40
codegen_flags: <defaults>
</compile_context>

<pallas_src>
import functools

import jax
import jax.numpy as jnp
from jax.experimental import pallas as pl
from jax.experimental.pallas import tpu as pltpu


def _round_up(x, m):
    return (x + m - 1) // m * m


# ----------------------------- Pallas kernel --------------------------------
def _patch_embed_kernel(x_ref, w_ref, b_ref, o_ref):
    # x_ref : (tm, K)       flattened-patch tile (f32 or bf16), K unpadded
    # w_ref : (K, N_pad)    conv weight as a matmul operand (f32 or bf16)
    # b_ref : (1, N_pad)    conv bias (f32)
    # o_ref : (tm, N_pad)   output tile (lane-dense when N_pad % 128 == 0)
    acc = jnp.dot(x_ref[...], w_ref[...], preferred_element_type=jnp.float32)
    o_ref[...] = (acc + b_ref[...]).astype(o_ref.dtype)


def _pick_tile_m(M, use_bf16):
    """M tile: big (mem-bound sweet spot), >=2 grid steps for v7x megacore,
    clamped so tiny problems aren't padded to huge mostly-empty tiles."""
    base = 1024 if use_bf16 else 512
    steps = 1 if M <= 16 else max(2, pl.cdiv(M, base))
    return _round_up(pl.cdiv(M, steps), 16)


def _patch_embed_matmul(patches, w_mat, bias, out_dtype, *, tm):
    M, K = patches.shape
    _, N_pad = w_mat.shape
    grid = (pl.cdiv(M, tm),)

    in_item = patches.dtype.itemsize
    w_item = w_mat.dtype.itemsize
    out_item = jnp.dtype(out_dtype).itemsize

    # Double-buffered blocks (pipeliner allocates 2 buffers per spec) + headroom
    # for Mosaic internal scratch; capped under v7x's 64 MiB physical VMEM.
    vmem_bytes = 2 * (tm * K * in_item
                      + K * N_pad * w_item
                      + N_pad * 4
                      + tm * N_pad * out_item) + 4 * 1024 * 1024
    vmem_limit = int(min(48 * 1024 * 1024, max(8 * 1024 * 1024, vmem_bytes)))

    flops = 2 * M * K * N_pad
    bytes_accessed = (patches.size * in_item
                      + w_mat.size * w_item
                      + bias.size * bias.dtype.itemsize
                      + M * N_pad * out_item)

    return pl.pallas_call(
        _patch_embed_kernel,
        out_shape=jax.ShapeDtypeStruct((M, N_pad), out_dtype),
        grid_spec=pltpu.PrefetchScalarGridSpec(
            num_scalar_prefetch=0,
            grid=grid,
            in_specs=[
                pl.BlockSpec((tm, K), lambda i: (i, 0)),
                pl.BlockSpec((K, N_pad), lambda i: (0, 0)),
                pl.BlockSpec((1, N_pad), lambda i: (0, 0)),
            ],
            out_specs=pl.BlockSpec((tm, N_pad), lambda i: (i, 0)),
        ),
        compiler_params=pltpu.CompilerParams(
            dimension_semantics=("parallel",),
            vmem_limit_bytes=vmem_limit,
        ),
        cost_estimate=pl.CostEstimate(
            flops=flops, transcendentals=0, bytes_accessed=bytes_accessed
        ),
    )(patches, w_mat, bias)


# ------------------------------ Wrapper --------------------------------------
@functools.partial(jax.jit,
                   static_argnames=("patch_size", "use_bf16", "tokens_out"))
def cnn_forward(x_nchw, conv_w, conv_b, *, patch_size, use_bf16=False,
                tokens_out=False):
    """Equivalent of CNN.forward when hybrid_model is None.

    x_nchw : [B, C, H, W]       (PyTorch NCHW convention)
    conv_w : [hidden, C, P, P]  (torch Conv2d weight layout)
    conv_b : [hidden]
    returns:
      tokens_out=False -> [B, hidden, H/P, W/P]  (NCHW, matches torch Conv2d)
      tokens_out=True  -> [B, (H/P)*(W/P), hidden]  (token-major, what the ViT
                           consumer builds anyway; skips one HBM round trip)
    """
    B, C, H, W = x_nchw.shape
    P = patch_size
    hidden = conv_w.shape[0]
    Hp, Wp = H // P, W // P
    M = B * Hp * Wp
    K = C * P * P

    op_dtype = jnp.bfloat16 if use_bf16 else x_nchw.dtype
    out_dtype = jnp.bfloat16 if use_bf16 else x_nchw.dtype

    x = x_nchw.astype(op_dtype)
    w = conv_w.astype(op_dtype)

    # Extract non-overlapping patches, flattened in (c, kh, kw) order to match
    # torch Conv2d weight flattening.
    # TODO(synk): still one XLA-side HBM pass (see header note).
    xp = x.reshape(B, C, Hp, P, Wp, P)
    xp = jnp.transpose(xp, (0, 2, 4, 1, 3, 5))            # [B, Hp, Wp, C, P, P]
    patches = xp.reshape(M, K)                            # [M, K] (K unpadded)

    w_mat = w.reshape(hidden, K).T                        # [K, N]
    bias = conv_b.reshape(1, hidden).astype(jnp.float32)  # [1, N]

    # Pad N only when hidden isn't already lane-aligned (keeps unmasked vst).
    N_pad = hidden if hidden % 128 == 0 else _round_up(hidden, 128)
    if N_pad != hidden:
        w_mat = jnp.pad(w_mat, ((0, 0), (0, N_pad - hidden)))
        bias = jnp.pad(bias, ((0, 0), (0, N_pad - hidden)))

    tm = _pick_tile_m(M, use_bf16)

    out = _patch_embed_matmul(patches, w_mat, bias, out_dtype, tm=tm)  # [M, N_pad]

    if N_pad != hidden:
        out = out[:, :hidden]

    if tokens_out:
        return out.reshape(B, Hp * Wp, hidden)

    out = out.reshape(B, Hp, Wp, hidden)
    return jnp.transpose(out, (0, 3, 1, 2))               # NCHW: [B, hidden, Hp, Wp]


if __name__ == "__main__":
    # Small config consistent with the ViT patch-embedding path:
    #   config.patches['size'] = 4, config.hidden_size = 32, img_size = 16
    B, C, H, W = 2, 3, 16, 16
    P = 4
    hidden = 32

    key = jax.random.PRNGKey(0)
    kx, kw, kb = jax.random.split(key, 3)
    x = jax.random.normal(kx, (B, C, H, W), dtype=jnp.float32)
    conv_w = jax.random.normal(kw, (hidden, C, P, P), dtype=jnp.float32) * 0.02
    conv_b = jax.random.normal(kb, (hidden,), dtype=jnp.float32) * 0.02

    # Reference: plain-JAX strided conv (= patch embedding) for sanity check.
    ref = jax.lax.conv_general_dilated(
        x, conv_w, window_strides=(P, P), padding="VALID",
        dimension_numbers=("NCHW", "OIHW", "NCHW"),
    ) + conv_b.reshape(1, hidden, 1, 1)
    ref_tok = jnp.transpose(ref.reshape(B, hidden, -1), (0, 2, 1))

    # f32 NCHW path (matches torch Conv2d output layout).
    out_f32 = jax.block_until_ready(cnn_forward(x, conv_w, conv_b, patch_size=P))
    assert out_f32.shape == (B, hidden, H // P, W // P), out_f32.shape
    assert jnp.allclose(out_f32, ref, atol=1e-4, rtol=1e-4)

    # Token-major output path (skips the NCHW writeback round trip).
    out_tok = jax.block_until_ready(
        cnn_forward(x, conv_w, conv_b, patch_size=P, tokens_out=True))
    assert out_tok.shape == (B, (H // P) * (W // P), hidden), out_tok.shape
    assert jnp.allclose(out_tok, ref_tok, atol=1e-4, rtol=1e-4)

    # bf16-operand path (f32 accumulation, bf16 output) — loose tolerance.
    out_bf16 = jax.block_until_ready(
        cnn_forward(x, conv_w, conv_b, patch_size=P, use_bf16=True))
    assert out_bf16.shape == ref.shape
    assert out_bf16.dtype == jnp.bfloat16
    assert jnp.allclose(out_bf16.astype(jnp.float32), ref, atol=5e-2, rtol=5e-2)

    print("KERNEL_OK")
</pallas_src>

<mosaic_0001>
module attributes {stable_mosaic.version = 11 : i64} {
  func.func @_patch_embed_kernel(%arg0: i32, %arg1: memref<16x48xf32, #tpu.memory_space<vmem>>, %arg2: memref<48x128xf32, #tpu.memory_space<vmem>>, %arg3: memref<1x128xf32, #tpu.memory_space<vmem>>, %arg4: memref<16x128xf32, #tpu.memory_space<vmem>>) attributes {dimension_semantics = [#tpu.dimension_semantics<parallel>], iteration_bounds = array<i64: 2>, scalar_prefetch = 0 : i64, scratch_operands = 0 : i64, tpu.core_type = #tpu.core_type<tc>, window_params = [{transform_indices = @transform_0, window_bounds = array<i64: 16, 48>}, {pipeline_mode = #tpu.pipeline_mode<synchronous>, transform_indices = @transform_1, window_bounds = array<i64: 48, 128>}, {pipeline_mode = #tpu.pipeline_mode<synchronous>, transform_indices = @transform_2, window_bounds = array<i64: 1, 128>}, {transform_indices = @transform_3, window_bounds = array<i64: 16, 128>}]} {
    %c0 = arith.constant 0 : index
    %c0_0 = arith.constant 0 : index
    %0 = vector.load %arg1[%c0, %c0_0] : memref<16x48xf32, #tpu.memory_space<vmem>>, vector<16x48xf32>
    %c0_1 = arith.constant 0 : index
    %c0_2 = arith.constant 0 : index
    %1 = vector.load %arg2[%c0_1, %c0_2] : memref<48x128xf32, #tpu.memory_space<vmem>>, vector<48x128xf32>
    %cst = arith.constant dense<0.000000e+00> : vector<16x128xf32>
    %2 = tpu.matmul %0, %1, %cst {dimension_numbers = #tpu.dot_dimension_numbers<[1], [0], [0], [1], [0, 0, 1, 1], [], []>} : vector<16x48xf32>, vector<48x128xf32>, vector<16x128xf32> -> vector<16x128xf32>
    %c0_3 = arith.constant 0 : index
    %c0_4 = arith.constant 0 : index
    %3 = vector.load %arg3[%c0_3, %c0_4] : memref<1x128xf32, #tpu.memory_space<vmem>>, vector<1x128xf32>
    %4 = vector.broadcast %3 : vector<1x128xf32> to vector<16x128xf32>
    %5 = arith.addf %2, %4 : vector<16x128xf32>
    %c0_5 = arith.constant 0 : index
    %c0_6 = arith.constant 0 : index
    %6 = vector.load %arg4[%c0_5, %c0_6] : memref<16x128xf32, #tpu.memory_space<vmem>>, vector<16x128xf32>
    tpu.vector_store %arg4[%c0_5, %c0_6], %5 {strides = array<i32>} : memref<16x128xf32, #tpu.memory_space<vmem>>, vector<16x128xf32>,
    return
  }
  func.func @transform_0(%arg0: i32) -> (i32, i32) {
    %c0_i32 = arith.constant 0 : i32
    %c0_i32_0 = arith.constant 0 : i32
    return %arg0, %c0_i32 : i32, i32
  }
  func.func @transform_1(%arg0: i32) -> (i32, i32) {
    %c0_i32 = arith.constant 0 : i32
    %c0_i32_0 = arith.constant 0 : i32
    %c0_i32_1 = arith.constant 0 : i32
    return %c0_i32, %c0_i32_0 : i32, i32
  }
  func.func @transform_2(%arg0: i32) -> (i32, i32) {
    %c0_i32 = arith.constant 0 : i32
    %c0_i32_0 = arith.constant 0 : i32
    %c0_i32_1 = arith.constant 0 : i32
    return %c0_i32, %c0_i32_0 : i32, i32
  }
  func.func @transform_3(%arg0: i32) -> (i32, i32) {
    %c0_i32 = arith.constant 0 : i32
    %c0_i32_0 = arith.constant 0 : i32
    return %arg0, %c0_i32 : i32, i32
  }
}

</mosaic_0001>

<bundles_post_ra>
// kernel: cnn_forward.1
= control target key start
LH: loop header
LB: loop body
LE: loop exit
PB: predicated region body
PF: predicated region fallthrough
CT: control target
= control target key end

     0   :  { %8 = vsyncpa [#allocation3], 0  ;;  %s548_s0 = inlined_call_operand.vmem [shape: f32[32,48], index: 0, kind: input, shape index: {}]   ;;  %s549_s1 = inlined_call_operand.vmem [shape: f32[48,128], index: 1, kind: input, shape index: {}]   ;;  %s550_s2 = inlined_call_operand.vmem [shape: f32[1,128], index: 2, kind: input, shape index: {}]   ;;  %s551_s3 = inlined_call_operand.hbm [shape: f32[32,128], index: 3, kind: output, shape index: {}]  }
   0x1   :  { %10 = vsyncpa [#allocation3 + $0x1], 0  ;;  %s443_s12 = smov 0   ;;  %s445_s13 = smov 0  }
   0x2   :  { %s447_s14 = smov 0   ;;  %s449_s15 = smov 0  }
   0x3 LB: > { %s464_s16 = sadd.s32 4294967295, %s419_s15   ;;  %s294_s17 = sadd.s32 4294967294, %s419_s15   ;;  %s419_s15 = sphi %s449_s15, %s557_s15   ;;  %s415_s14 = sphi %s447_s14, %s556_s14   ;;  %s411_s13 = sphi %s445_s13, %s555_s13   ;;  %s407_s12 = sphi %s443_s12, %s554_s12  }
   0x4   : > { %s468_s18 = sadd.s32 1, %s419_s15   ;;  %s91_s19 = sadd.s32 1, %s415_s14 }
   0x5   : > { %s88_s20 = ssub.s32 %s419_s15, %s468_s18  ;;  %p101_p0 = scmp.ne.s32.totalorder %s415_s14, %s411_s13 }
   0x6   : > { %p89_p1 = scmp.eq.s32.totalorder %s88_s20, 0  ;;  %p102_p2 = scmp.eq.s32.totalorder %s464_s16, 1 }
   0x7   : > { %p107_p3 = scmp.ne.s32.totalorder %s411_s13, %s407_s12  ;;  %p108_p4 = scmp.eq.s32.totalorder %s294_s17, 1 }
   0x8   : > { %s479_s21 = scalar_select %p89_p1, %s415_s14, %s91_s19  }
   0x9   : > { %p481_p5 = por %p102_p2, %p101_p0  ;;  %p485_p6 = por %p108_p4, %p107_p3 }
   0xa   : > { %p297_p7 = scmp.ge.s32.totalorder %s419_s15, 1  ;;  %p141_p8 = scmp.lt.s32.totalorder %s419_s15, 3 }
   0xc   : > { %p142_p9 = pnand %p297_p7, %p141_p8 }
   0xd   : > { %s299_s28 = sshll.u32 (!%p142_p9), %s464_s16, 1  ;;  %s162_s20 = sand.u32 (!%p142_p9), 1, %s411_s13  }
   0xe   : > { %145 = sbr.rel (%p142_p9) target bundleno = 164 (0xa4), region = 32  ;;  %p166_p10 = scmp.lt.s32.totalorder (!%p142_p9), %s299_s28, 3 }
   0xf   : > { %s298_s24 = sshll.u32 (!%p142_p9), %s162_s20, 4  ;;  %s308_s25 = sshll.u32 (!%p142_p9), %s464_s16, 4 }
  0x10   : > { %s164_s4 = scalar_lea.vmem (!%p142_p9), [#allocation2], %s298_s24  ;;  %s217_s16 = scalar_lea.sflag (!%p142_p9), [#allocation3], %s162_s20 }
  0x11   : > { %s229_s5 = sshll.u32 (!%p142_p9), %s164_s4, 4  ;;  %s230_s5 = int_to_ptr.vmem [resolvable:$true] %s229_s5 }
  0x13   : > { %v179_v0 = vld [vmem:[%s549_s1 + $0x28] sm:$0xff]  ;;  %v178_v1 = vld [vmem:[%s549_s1 + $0x20] sm:$0xff]  ;;  %v177_v2 = vld [vmem:[%s549_s1 + $0x18] sm:$0xff]  ;;  %s559_s28 = smov (!%p166_p10, %s299_s28), 3  ;;  %vm184_vm0 = vcmask 392192  }
  0x14   : > { %201 = vmatpush.msra.mxu0 %v179_v0  ;;  %309 = vmatpush.msra.mxu1 %v179_v0  ;;  %v176_v3 = vld [vmem:[%s549_s1 + $0x10] sm:$0xff]  ;;  %s300_s6 = sshll.u32 %s559_s28, 3  ;;  %v175_v4 = vld [vmem:[%s549_s1 + $0x8] sm:$0xff]  ;;  %v174_v5 = vld [vmem:[%s549_s1] sm:$0xff]  ;;  %s228_s28 = scalar_lea.hbm %s551_s3, %s308_s25 }
  0x15   : > { %s169_s11 = scalar_lea.vmem %s548_s0, %s300_s6  ;;  %v356_v8 = vld [vmem:[%s550_s2] ss:$0 sm:$0xff]  ;;  %s231_s6 = sshll.u32 %s228_s28, 4  ;;  %s232_s6 = int_to_ptr.hbm [resolvable:$true] %s231_s6 }
  0x16   : > { %202 = vmatpush.msra.mxu0 %v178_v1  ;;  %310 = vmatpush.msra.mxu1 %v178_v1  ;;  %v172_v6 = vld [vmem:[%s169_s11] sm:$0xff]  ;;  %v173_v7 = vld [vmem:[%s169_s11 + $0x8] sm:$0xff]  ;;  %s371_s7 = sshra.s32 %s232_s6, 4  ;;  %s377_s11 = scalar_lea.hbm %s551_s3, 32  ;;  %s372_s7 = int_to_ptr.hbm [resolvable:$true] %s371_s7 }
  0x17   : > { %s373_s8 = scalar_lea.hbm %s372_s7, 16  ;;  %p378_p0 = scmp.lt.s32.totalorder %s372_s7, %s551_s3 }
  0x18   : > { %203 = vmatpush.msra.mxu0 %v177_v2  ;;  %311 = vmatpush.msra.mxu1 %v177_v2  ;;  %p374_p11 = scmp.ne.s32.totalorder %s372_s7, %s373_s8  ;;  %p379_p1 = scmp.lt.s32.totalorder %s377_s11, %s373_s8 }
  0x1a   : > { %204 = vmatpush.msra.mxu0 %v176_v3  ;;  %312 = vmatpush.msra.mxu1 %v176_v3  ;;  %p375_p12 = pnand %p374_p11, %p481_p5  ;;  %p380_p2 = por %p379_p1, %p378_p0 }
  0x1c   : > { %205 = vmatpush.msra.mxu0 %v175_v4  ;;  %313 = vmatpush.msra.mxu1 %v175_v4  ;;  %p376_p13 = pneg %p375_p12 }
  0x1e   : > { %206 = vmatpush.msra.mxu0 %v174_v5  ;;  %314 = vmatpush.msra.mxu1 %v174_v5  ;;  %p381_p3 = pnand %p380_p2, %p376_p13 }
  0x1f   : > { %301 = vmatmul.msk.f32.vlgmr.msra.gmra.mxu0 %vm184_vm0, %v172_v6  ;;  %302 = vmatmul.msk.f32.vlgmr.msra.gmra.mxu1 %vm184_vm0, %v173_v7 }
  0x9c   : > { %v208_v9 = vpop.f32.mrf.mxu0  ;;  %v211_v10 = vpop.f32.mrf.mxu1 }
  0x9d   : > { %v209_v11 = vadd.f32 %v356_v8, %v208_v9  ;;  %v212_v12 = vadd.f32 %v356_v8, %v211_v10 }
  0x9f   : > { %214 = vst [vmem:[%s164_s4] sm:$0xff] %v209_v11 }
  0xa0   : > { %215 = vst [vmem:[%s164_s4 + $0x8] sm:$0xff] %v212_v12 }
  0xa1   : > { %384 = shalt.err (!%p381_p3)
}
  0xa2   : > { %s421_s20 = smov 128   ;;  %s422_s24 = smov 8  }
  0xa3   : > { %315 = dma.vmem_to_hbm [thread:$0]  (%p481_p5), %s230_s5, 256, %s232_s6, %s217_s16, %s421_s20, %s421_s20, %s422_s24  }
  0xa4 PF: > { %p321_p4 = scmp.ge.s32.totalorder %s419_s15, 2  ;;  %s246_s25 = sand.u32 1, %s407_s12  }
  0xa5   : > { %s247_s26 = scalar_lea.sflag [#allocation3], %s246_s25 }
  0xa6   : > { %p318_p7 = pnand %p321_p4, %p485_p6 }
  0xa8   : > { %p319_p8 = pneg %p318_p7 }
  0xaa   : > { %402 = dma.done.wait (%p319_p8), %s247_s26, 256  }
  0xab   : > { %404 = vsyncadd (%p319_p8), %s247_s26, 4294967040  ;;  %p13_p9 = scmp.ge.s32.totalorder %s468_s18, 4   ;;  %s554_s12 = smov %s411_s13 }
  0xac   : > { %s555_s13 = smov %s415_s14  ;;  %s556_s14 = smov %s479_s21 }
  0xad   : > { %s557_s15 = smov %s468_s18  ;;  %15 = sbr.rel (!%p13_p9) target bundleno = 3 (0x3), region = 67 }
  0xb2   :  { %253 = vsyncpa [#allocation3], 1 }
  0xb3   :  { %255 = vsyncpa [#allocation3 + $0x1], 1 }

</bundles_post_ra>
